<compile_context>
chip_gen: v7x
topology: tpu7x:2x2x1
jax: 0.10.0
libtpu: 0.0.40
codegen_flags: <defaults>
</compile_context>

<pallas_src>
import functools

import jax
import jax.numpy as jnp
from jax import lax
from jax.experimental import pallas as pl
from jax.experimental.pallas import tpu as pltpu

LANES = 128
SUBLANES = 8
DEFAULT_BLOCK_ROWS = 8192   # 8192 * 128 * 4 B = 4 MiB per f32 input block


def _dice_partials_kernel(x_ref, t_ref, o_ref, *, threshold, tail_rows,
                          needs_mask):
    """Accumulate (intersection, pred_sum, tgt_sum) partials into o_ref.

    o_ref has shape (3, 8, 128); its index_map is constant across the grid so
    it stays resident in VMEM and acts as the accumulator (written back once).
    """
    i = pl.program_id(0)
    last = pl.num_programs(0) - 1

    @pl.when(i == 0)
    def _():
        o_ref[...] = jnp.zeros_like(o_ref)

    x = x_ref[...]                                   # native dtype
    t = t_ref[...].astype(jnp.float32)               # targets.float()
    x_bin = (x > threshold).astype(jnp.float32)      # (inputs > threshold).float()

    def accumulate(xb, tv):
        # (blk, 128) -> (blk // 8, 8, 128) keeps each native (8, 128) tile
        # intact, so the reshape is free and the axis-0 sums are pure
        # elementwise vreg adds (no per-step XLU / sub-sublane store traffic).
        o_ref[0] += jnp.sum((xb * tv).reshape(-1, SUBLANES, LANES), axis=0)
        o_ref[1] += jnp.sum(xb.reshape(-1, SUBLANES, LANES), axis=0)
        o_ref[2] += jnp.sum(tv.reshape(-1, SUBLANES, LANES), axis=0)

    if needs_mask:
        # Raggedness only lives in the final block: every earlier step runs
        # the cheap unmasked path (keeps steady state HBM-bound).
        @pl.when(i < last)
        def _():
            accumulate(x_bin, t)

        @pl.when(i == last)
        def _():
            blk = x_bin.shape[0]
            row_ids = lax.broadcasted_iota(jnp.int32, (blk, LANES), 0)
            valid = row_ids < tail_rows   # static, block-local (no overflow)
            accumulate(jnp.where(valid, x_bin, 0.0), jnp.where(valid, t, 0.0))
    else:
        accumulate(x_bin, t)


def _vmem_limit_bytes(blk_rows, x_itemsize, t_itemsize):
    # Two pipeline buffers per input block + accumulator/output + headroom.
    needed = 2 * blk_rows * LANES * (x_itemsize + t_itemsize) + (2 << 20)
    try:
        cap = int(pltpu.get_tpu_info().vmem_capacity_bytes)
    except Exception:   # non-TPU backend / interpret mode fallback
        cap = 64 << 20
    cap = (cap * 3) // 4   # ~96 MiB on v5e/v6e (128 MiB), ~48 MiB on v7x (64 MiB)
    return int(min(max(needed, 32 << 20), cap))


def _partials_jnp(x_flat, t_flat, threshold):
    xb = (x_flat > threshold).astype(jnp.float32)
    tv = t_flat.astype(jnp.float32)
    return jnp.sum(xb * tv), jnp.sum(xb), jnp.sum(tv)


def dice_coeff(inputs, targets, smooth=1.0, threshold=0.5,
               block_rows=DEFAULT_BLOCK_ROWS):
    """Pallas TPU implementation of Dice_Coeff.forward. Returns a scalar f32."""
    assert inputs.shape == targets.shape
    assert block_rows >= SUBLANES and block_rows % SUBLANES == 0

    smooth = float(smooth)
    threshold = float(threshold)

    n = 1
    for d in inputs.shape:
        n *= int(d)

    x_flat = inputs.reshape(-1)
    t_flat = targets.reshape(-1)

    rows = n // LANES          # 128-aligned prefix streamed by the kernel
    rem = n % LANES            # <=127 trailing elements handled in plain jnp

    if rows < SUBLANES:
        # Tiny input (< 1024 elements): not worth a kernel launch.
        inter, psum, tsum = _partials_jnp(x_flat, t_flat, threshold)
        return (2.0 * inter + smooth) / (psum + tsum + smooth)

    n_aligned = rows * LANES
    if rem:
        # No full-array jnp.pad: only the aligned prefix feeds the kernel.
        x2 = x_flat[:n_aligned].reshape(rows, LANES)
        t2 = t_flat[:n_aligned].reshape(rows, LANES)
    else:
        x2 = x_flat.reshape(rows, LANES)   # free reshape (contiguous)
        t2 = t_flat.reshape(rows, LANES)

    # Block height: always a multiple of 8 (so accumulation stays full-vreg),
    # as large as possible to amortize the per-grid-step pipeline overhead.
    blk = block_rows if rows >= block_rows else (rows // SUBLANES) * SUBLANES
    grid = (pl.cdiv(rows, blk),)
    tail_rows = rows % blk
    needs_mask = tail_rows != 0

    kernel = functools.partial(
        _dice_partials_kernel,
        threshold=threshold,
        tail_rows=tail_rows,
        needs_mask=needs_mask,
    )

    bytes_accessed = rows * LANES * (x2.dtype.itemsize + t2.dtype.itemsize)
    cost = pl.CostEstimate(flops=4 * rows * LANES, transcendentals=0,
                           bytes_accessed=int(bytes_accessed))

    # TODO(synk): v7x megacore split (leading size-2 "parallel" grid axis with
    # per-core partial-sum rows) for ~2x streaming bandwidth on large inputs.
    partials = pl.pallas_call(
        kernel,
        out_shape=jax.ShapeDtypeStruct((3, SUBLANES, LANES), jnp.float32),
        grid_spec=pltpu.PrefetchScalarGridSpec(
            num_scalar_prefetch=0,
            grid=grid,
            in_specs=[
                pl.BlockSpec((blk, LANES), lambda i: (i, 0)),
                pl.BlockSpec((blk, LANES), lambda i: (i, 0)),
            ],
            out_specs=pl.BlockSpec((3, SUBLANES, LANES), lambda i: (0, 0, 0)),
        ),
        compiler_params=pltpu.CompilerParams(
            dimension_semantics=("arbitrary",),
            vmem_limit_bytes=_vmem_limit_bytes(blk, x2.dtype.itemsize,
                                               t2.dtype.itemsize),
            allow_input_fusion=[True, True] if rem else None,
        ),
        cost_estimate=cost,
    )(x2, t2)

    sums = jnp.sum(partials, axis=(1, 2))       # tiny (3, 8, 128) reduce in XLA
    inter, psum, tsum = sums[0], sums[1], sums[2]

    if rem:
        it, pt, tt = _partials_jnp(x_flat[n_aligned:], t_flat[n_aligned:],
                                   threshold)
        inter = inter + it
        psum = psum + pt
        tsum = tsum + tt

    return (2.0 * inter + smooth) / (psum + tsum + smooth)


def dice_coeff_ref(inputs, targets, smooth=1.0, threshold=0.5):
    x = (inputs > threshold).astype(jnp.float32).reshape(-1)
    t = targets.astype(jnp.float32).reshape(-1)
    inter = jnp.sum(x * t)
    return (2.0 * inter + smooth) / (jnp.sum(x) + jnp.sum(t) + smooth)


if __name__ == "__main__":
    key = jax.random.PRNGKey(0)
    k1, k2, k3, k4, k5, k6 = jax.random.split(key, 6)

    # 1) Small NCHW f32 case (numel % 128 == 0 -> free reshape, single block).
    inputs = jax.random.uniform(k1, (2, 4, 16, 16), dtype=jnp.float32)
    targets = (jax.random.uniform(k2, (2, 4, 16, 16)) > 0.5).astype(jnp.float32)
    dice = jax.block_until_ready(dice_coeff(inputs, targets, smooth=1.0, threshold=0.5))
    ref = dice_coeff_ref(inputs, targets, smooth=1.0, threshold=0.5)
    assert jnp.allclose(dice, ref, atol=1e-6, rtol=1e-6), (dice, ref)

    # 2) Multi-block with a ragged last block (exercises the masked last step).
    x2 = jax.random.uniform(k3, (2, 4, 16, 20), dtype=jnp.float32)   # 2560 elems -> 20 rows
    t2 = (jax.random.uniform(k4, (2, 4, 16, 20)) > 0.5).astype(jnp.float32)
    dice2 = jax.block_until_ready(dice_coeff(x2, t2, block_rows=8))
    ref2 = dice_coeff_ref(x2, t2)
    assert jnp.allclose(dice2, ref2, atol=1e-6, rtol=1e-6), (dice2, ref2)

    # 3) Lane-ragged numel (2100 % 128 != 0): aligned prefix in-kernel, tail in jnp.
    x3 = jax.random.uniform(k5, (3, 5, 7, 20), dtype=jnp.float32)
    t3 = (jax.random.uniform(k6, (3, 5, 7, 20)) > 0.5).astype(jnp.float32)
    dice3 = jax.block_until_ready(dice_coeff(x3, t3))
    ref3 = dice_coeff_ref(x3, t3)
    assert jnp.allclose(dice3, ref3, atol=1e-6, rtol=1e-6), (dice3, ref3)

    # 4) Native-dtype streaming: bf16 inputs, f32 mask targets.
    xb = inputs.astype(jnp.bfloat16)
    dice4 = jax.block_until_ready(dice_coeff(xb, targets))
    ref4 = dice_coeff_ref(xb, targets)
    assert jnp.allclose(dice4, ref4, atol=1e-6, rtol=1e-6), (dice4, ref4)

    # 5) Tiny input (< 1024 elements): pure-jnp fallback path.
    xt = inputs[:1, :1, :4, :4]
    tt = targets[:1, :1, :4, :4]
    dice5 = jax.block_until_ready(dice_coeff(xt, tt))
    ref5 = dice_coeff_ref(xt, tt)
    assert jnp.allclose(dice5, ref5, atol=1e-6, rtol=1e-6), (dice5, ref5)

    print("KERNEL_OK")
</pallas_src>

<mosaic_0001>
module attributes {stable_mosaic.version = 11 : i64} {
  func.func @_dice_partials_kernel(%arg0: i32, %arg1: memref<16x128xf32, #tpu.memory_space<vmem>>, %arg2: memref<16x128xf32, #tpu.memory_space<vmem>>, %arg3: memref<3x8x128xf32, #tpu.memory_space<vmem>>) attributes {dimension_semantics = [#tpu.dimension_semantics<arbitrary>], iteration_bounds = array<i64: 1>, scalar_prefetch = 0 : i64, scratch_operands = 0 : i64, tpu.core_type = #tpu.core_type<tc>, window_params = [{transform_indices = @transform_0, window_bounds = array<i64: 16, 128>}, {transform_indices = @transform_1, window_bounds = array<i64: 16, 128>}, {pipeline_mode = #tpu.pipeline_mode<synchronous>, transform_indices = @transform_2, window_bounds = array<i64: 3, 8, 128>}]} {
    %c0_i32 = arith.constant 0 : i32
    %0 = arith.cmpi eq, %arg0, %c0_i32 : i32
    %1 = arith.extui %0 : i1 to i32
    %c0_i32_0 = arith.constant 0 : i32
    %2 = arith.cmpi ne, %1, %c0_i32_0 : i32
    scf.if %2 {
      %cst_23 = arith.constant 0.000000e+00 : f32
      %34 = vector.broadcast %cst_23 : f32 to vector<3x8x128xf32>
      %c0_24 = arith.constant 0 : index
      %c0_25 = arith.constant 0 : index
      %c0_26 = arith.constant 0 : index
      %35 = vector.load %arg3[%c0_24, %c0_25, %c0_26] : memref<3x8x128xf32, #tpu.memory_space<vmem>>, vector<3x8x128xf32>
      tpu.vector_store %arg3[%c0_24, %c0_25, %c0_26], %34 {strides = array<i32>} : memref<3x8x128xf32, #tpu.memory_space<vmem>>, vector<3x8x128xf32>,
    } else {
    }
    %c0 = arith.constant 0 : index
    %c0_1 = arith.constant 0 : index
    %3 = vector.load %arg1[%c0, %c0_1] : memref<16x128xf32, #tpu.memory_space<vmem>>, vector<16x128xf32>
    %c0_2 = arith.constant 0 : index
    %c0_3 = arith.constant 0 : index
    %4 = vector.load %arg2[%c0_2, %c0_3] : memref<16x128xf32, #tpu.memory_space<vmem>>, vector<16x128xf32>
    %cst = arith.constant 5.000000e-01 : f32
    %5 = vector.broadcast %cst : f32 to vector<16x128xf32>
    %6 = arith.cmpf ogt, %3, %5 : vector<16x128xf32>
    %7 = arith.extui %6 : vector<16x128xi1> to vector<16x128xi32>
    %8 = arith.sitofp %7 : vector<16x128xi32> to vector<16x128xf32>
    %c0_4 = arith.constant 0 : index
    %c0_5 = arith.constant 0 : index
    %c0_6 = arith.constant 0 : index
    %9 = vector.load %arg3[%c0_4, %c0_5, %c0_6] : memref<3x8x128xf32, #tpu.memory_space<vmem>>, vector<1x8x128xf32>
    %10 = vector.shape_cast %9 : vector<1x8x128xf32> to vector<8x128xf32>
    %11 = arith.mulf %8, %4 : vector<16x128xf32>
    %12 = vector.shape_cast %11 : vector<16x128xf32> to vector<2x8x128xf32>
    %cst_7 = arith.constant dense<0.000000e+00> : vector<8x128xf32>
    %13 = vector.multi_reduction <add>, %12, %cst_7 [0] : vector<2x8x128xf32> to vector<8x128xf32>
    %14 = arith.addf %10, %13 : vector<8x128xf32>
    %c0_8 = arith.constant 0 : index
    %c0_9 = arith.constant 0 : index
    %c0_10 = arith.constant 0 : index
    %15 = vector.load %arg3[%c0_8, %c0_9, %c0_10] : memref<3x8x128xf32, #tpu.memory_space<vmem>>, vector<1x8x128xf32>
    %16 = vector.shape_cast %15 : vector<1x8x128xf32> to vector<8x128xf32>
    %17 = vector.shape_cast %14 : vector<8x128xf32> to vector<1x8x128xf32>
    tpu.vector_store %arg3[%c0_8, %c0_9, %c0_10], %17 {strides = array<i32>} : memref<3x8x128xf32, #tpu.memory_space<vmem>>, vector<1x8x128xf32>,
    %c1 = arith.constant 1 : index
    %c0_11 = arith.constant 0 : index
    %c0_12 = arith.constant 0 : index
    %18 = vector.load %arg3[%c1, %c0_11, %c0_12] : memref<3x8x128xf32, #tpu.memory_space<vmem>>, vector<1x8x128xf32>
    %19 = vector.shape_cast %18 : vector<1x8x128xf32> to vector<8x128xf32>
    %20 = vector.shape_cast %8 : vector<16x128xf32> to vector<2x8x128xf32>
    %cst_13 = arith.constant dense<0.000000e+00> : vector<8x128xf32>
    %21 = vector.multi_reduction <add>, %20, %cst_13 [0] : vector<2x8x128xf32> to vector<8x128xf32>
    %22 = arith.addf %19, %21 : vector<8x128xf32>
    %c1_14 = arith.constant 1 : index
    %c0_15 = arith.constant 0 : index
    %c0_16 = arith.constant 0 : index
    %23 = vector.load %arg3[%c1_14, %c0_15, %c0_16] : memref<3x8x128xf32, #tpu.memory_space<vmem>>, vector<1x8x128xf32>
    %24 = vector.shape_cast %23 : vector<1x8x128xf32> to vector<8x128xf32>
    %25 = vector.shape_cast %22 : vector<8x128xf32> to vector<1x8x128xf32>
    tpu.vector_store %arg3[%c1_14, %c0_15, %c0_16], %25 {strides = array<i32>} : memref<3x8x128xf32, #tpu.memory_space<vmem>>, vector<1x8x128xf32>,
    %c2 = arith.constant 2 : index
    %c0_17 = arith.constant 0 : index
    %c0_18 = arith.constant 0 : index
    %26 = vector.load %arg3[%c2, %c0_17, %c0_18] : memref<3x8x128xf32, #tpu.memory_space<vmem>>, vector<1x8x128xf32>
    %27 = vector.shape_cast %26 : vector<1x8x128xf32> to vector<8x128xf32>
    %28 = vector.shape_cast %4 : vector<16x128xf32> to vector<2x8x128xf32>
    %cst_19 = arith.constant dense<0.000000e+00> : vector<8x128xf32>
    %29 = vector.multi_reduction <add>, %28, %cst_19 [0] : vector<2x8x128xf32> to vector<8x128xf32>
    %30 = arith.addf %27, %29 : vector<8x128xf32>
    %c2_20 = arith.constant 2 : index
    %c0_21 = arith.constant 0 : index
    %c0_22 = arith.constant 0 : index
    %31 = vector.load %arg3[%c2_20, %c0_21, %c0_22] : memref<3x8x128xf32, #tpu.memory_space<vmem>>, vector<1x8x128xf32>
    %32 = vector.shape_cast %31 : vector<1x8x128xf32> to vector<8x128xf32>
    %33 = vector.shape_cast %30 : vector<8x128xf32> to vector<1x8x128xf32>
    tpu.vector_store %arg3[%c2_20, %c0_21, %c0_22], %33 {strides = array<i32>} : memref<3x8x128xf32, #tpu.memory_space<vmem>>, vector<1x8x128xf32>,
    return
  }
  func.func @transform_0(%arg0: i32) -> (i32, i32) {
    %c0_i32 = arith.constant 0 : i32
    %c0_i32_0 = arith.constant 0 : i32
    return %arg0, %c0_i32 : i32, i32
  }
  func.func @transform_1(%arg0: i32) -> (i32, i32) {
    %c0_i32 = arith.constant 0 : i32
    %c0_i32_0 = arith.constant 0 : i32
    return %arg0, %c0_i32 : i32, i32
  }
  func.func @transform_2(%arg0: i32) -> (i32, i32, i32) {
    %c0_i32 = arith.constant 0 : i32
    %c0_i32_0 = arith.constant 0 : i32
    %c0_i32_1 = arith.constant 0 : i32
    %c0_i32_2 = arith.constant 0 : i32
    return %c0_i32, %c0_i32_0, %c0_i32_1 : i32, i32, i32
  }
}

</mosaic_0001>

<bundles_post_ra>
// kernel: tpu_custom_call.1
= control target key start
LH: loop header
LB: loop body
LE: loop exit
PB: predicated region body
PF: predicated region fallthrough
CT: control target
= control target key end

     0   :  { %7 = vsyncpa [#allocation3], 0  ;;  %s237_s0 = inlined_call_operand.hbm [shape: f32[16,128], index: 0, kind: input, shape index: {}]   ;;  %s238_s1 = inlined_call_operand.hbm [shape: f32[16,128], index: 1, kind: input, shape index: {}]   ;;  %s239_s2 = inlined_call_operand.hbm [shape: f32[3,8,128], index: 2, kind: output, shape index: {}]  }
   0x1   :  { %8 = vsyncpa [#allocation6], 0 }
   0x2   :  { %9 = vsyncpa [#allocation4], 0  ;;  %s171_s9 = smov [#allocation2]   ;;  %s99_s13 = scalar_lea.hbm %s237_s0, 256 }
   0x3   :  { %s15_s10 = sshll.u32 %s171_s9, 4  ;;  %p100_p0 = scmp.ne.s32.totalorder %s237_s0, %s99_s13  ;;  %s16_s10 = int_to_ptr.vmem [resolvable:$true] %s15_s10 }
   0x4   :  { %p103_p1 = scmp.lt.u32.totalorder %s99_s13, %s237_s0 }
   0x6   :  { %p105_p2 = pnand %p103_p1, %p100_p0 }
   0x8   :  { %108 = shalt.err (!%p105_p2)
}
   0x9   :  { %s109_s18 = scalar_lea.vmem %s16_s10, 256  ;;  %p114_p4 = scmp.lt.s32.totalorder %s16_s10, %s16_s10 }
   0xa   :  { %p110_p3 = scmp.ne.s32.totalorder %s16_s10, %s109_s18  ;;  %p115_p5 = scmp.lt.s32.totalorder %s109_s18, %s109_s18 }
   0xc   :  { %p116_p6 = por %p115_p5, %p114_p4 }
   0xe   :  { %p117_p7 = pnand %p116_p6, %p110_p3 }
  0x10   :  { %120 = shalt.err (!%p117_p7)
}
  0x11   :  { %s172_s19 = smov 128   ;;  %s173_s20 = smov 8  }
  0x12   :  { %21 = dma.hbm_to_vmem [thread:$0]  %s237_s0, 256, %s16_s10, [#allocation3], %s172_s19, %s172_s19, %s173_s20  }
  0x13   :  { %s174_s23 = smov [#allocation5]   ;;  %s121_s27 = scalar_lea.hbm %s238_s1, 256 }
  0x14   :  { %s27_s24 = sshll.u32 %s174_s23, 4  ;;  %p122_p8 = scmp.ne.s32.totalorder %s238_s1, %s121_s27  ;;  %s28_s24 = int_to_ptr.vmem [resolvable:$true] %s27_s24 }
  0x15   :  { %p125_p9 = scmp.lt.u32.totalorder %s121_s27, %s238_s1 }
  0x17   :  { %p127_p10 = pnand %p125_p9, %p122_p8 }
  0x19   :  { %130 = shalt.err (!%p127_p10)
}
  0x1a   :  { %s131_s4 = scalar_lea.vmem %s28_s24, 256  ;;  %p136_p12 = scmp.lt.s32.totalorder %s28_s24, %s28_s24 }
  0x1b   :  { %p132_p11 = scmp.ne.s32.totalorder %s28_s24, %s131_s4  ;;  %p137_p13 = scmp.lt.s32.totalorder %s131_s4, %s131_s4 }
  0x1d   :  { %p138_p0 = por %p137_p13, %p136_p12 }
  0x1f   :  { %p139_p1 = pnand %p138_p0, %p132_p11 }
  0x21   :  { %142 = shalt.err (!%p139_p1)
}
  0x22   :  { %33 = dma.hbm_to_vmem [thread:$0]  %s238_s1, 256, %s28_s24, [#allocation6], %s172_s19, %s172_s19, %s173_s20  }
  0x23   :  { %165 = dma.done.wait [#allocation3], 256  }
  0x24   :  { %166 = vsyncadd [#allocation3], 4294967040 }
  0x25   :  { %167 = dma.done.wait [#allocation6], 256  }
  0x26   :  { %168 = vsyncadd [#allocation6], 4294967040  ;;  %v47_v0 = vld [vmem:[#allocation2] sm:$0xff]  ;;  %v48_v1 = vld [vmem:[#allocation2 + $0x8] sm:$0xff]  ;;  %v175_v4 = vmov 0.0   ;;  %s176_s6 = smov [#allocation7]  }
  0x27   :  { %v49_v2 = vld [vmem:[#allocation5] sm:$0xff]  ;;  %v50_v3 = vld [vmem:[#allocation5 + $0x8] sm:$0xff]  ;;  %vm51_vm0 = vcmp.gt.f32.partialorder %v47_v0, 0.5  ;;  %vm52_vm1 = vcmp.gt.f32.partialorder %v48_v1, 0.5  ;;  %s78_s7 = sshll.u32 %s176_s6, 4  ;;  %s79_s7 = int_to_ptr.vmem [resolvable:$true] %s78_s7 }
  0x28   :  { %v91_v5 = vsel %vm51_vm0, 1.0, %v175_v4  ;;  %v92_v6 = vsel %vm52_vm1, 1.0, %v175_v4  ;;  %v70_v7 = vadd.f32 %v50_v3, %v49_v2  ;;  %s143_s1 = scalar_lea.vmem %s79_s7, 384  ;;  %p148_p3 = scmp.lt.s32.totalorder %s79_s7, %s79_s7 }
  0x29   :  { %v58_v8 = vmul.f32 %v91_v5, %v49_v2  ;;  %v59_v9 = vmul.f32 %v92_v6, %v50_v3  ;;  %v65_v10 = vadd.f32 %v92_v6, %v91_v5  ;;  %p144_p2 = scmp.ne.s32.totalorder %s79_s7, %s143_s1  ;;  %p149_p4 = scmp.lt.s32.totalorder %s143_s1, %s143_s1 }
  0x2a   :  { %72 = vst [vmem:[#allocation7 + $0x10] sm:$0xff] %v70_v7 }
  0x2b   :  { %v60_v11 = vadd.f32 %v59_v9, %v58_v8  ;;  %67 = vst [vmem:[#allocation7 + $0x8] sm:$0xff] %v65_v10  ;;  %p150_p5 = por %p149_p4, %p148_p3 }
  0x2d   :  { %62 = vst [vmem:[#allocation7] sm:$0xff] %v60_v11  ;;  %p151_p6 = pnand %p150_p5, %p144_p2 }
  0x2f   :  { %154 = shalt.err (!%p151_p6)
}
  0x30   :  { %s155_s10 = scalar_lea.hbm %s239_s2, 384 }
  0x31   :  { %p156_p7 = scmp.ne.s32.totalorder %s239_s2, %s155_s10  ;;  %p159_p8 = scmp.lt.u32.totalorder %s155_s10, %s239_s2 }
  0x33   :  { %p161_p9 = pnand %p159_p8, %p156_p7 }
  0x35   :  { %164 = shalt.err (!%p161_p9)
}
  0x36   :  { %84 = dma.vmem_to_hbm [thread:$0]  %s79_s7, 384, %s239_s2, [#allocation4], %s172_s19, %s172_s19, %s173_s20  }
  0x37   :  { %169 = dma.done.wait [#allocation4], 384  }
  0x38   :  { %170 = vsyncadd [#allocation4], 4294966912 }
  0x39   :  { %88 = vsyncpa [#allocation3], 1 }
  0x3a   :  { %89 = vsyncpa [#allocation6], 1 }
  0x3b   :  { %90 = vsyncpa [#allocation4], 1 }

</bundles_post_ra>
